<compile_context>
chip_gen: v7x
topology: tpu7x:2x2x1
jax: 0.10.0
libtpu: 0.0.40
codegen_flags: <defaults>
</compile_context>

<pallas_src>
import functools

import jax
import jax.numpy as jnp
from jax.experimental import pallas as pl
from jax.experimental.pallas import tpu as pltpu


def _round_up(x, m):
    return (x + m - 1) // m * m


# ----------------------------------------------------------------------------
# Pallas kernel (neighbor aggregation + bias)
#   a_ref  : (TM, TK)        bf16   adjacency tile
#   xp_ref : (TK, C_out_p)   bf16   X' = x @ W^T  K-slice (lane-dense)
#   b_ref  : (1, C_out_p)    f32    bias (lane-padded)
#   o_ref  : (TM, C_out_p)   f32    output tile
#   acc_ref: (TM, C_out_p)   f32    VMEM accumulator (persists over k)
# ----------------------------------------------------------------------------
def gcn_agg_kernel(a_ref, xp_ref, b_ref, o_ref, acc_ref):
    k = pl.program_id(1)

    @pl.when(k == 0)
    def _init():
        acc_ref[...] = jnp.zeros_like(acc_ref)

    # Aggregation for this (row-tile, K-tile): MXU matmul, f32 accumulate.
    acc_ref[...] += jnp.dot(
        a_ref[...], xp_ref[...], preferred_element_type=jnp.float32
    )

    @pl.when(k == pl.num_programs(1) - 1)
    def _finalize():
        # Padded (all-zero) rows also receive the bias here; they are sliced
        # off in the wrapper, so this is inert.
        o_ref[...] = acc_ref[...] + b_ref[...]


# ----------------------------------------------------------------------------
# Tile selection with layout-aware VMEM accounting.
# ----------------------------------------------------------------------------
_VMEM_BUDGET = 40 << 20  # safe under v7x's 64 MiB physical VMEM


def _vmem_need(tm, tk, c_out_p, a_bytes):
    return (
        2 * tm * tk * a_bytes        # A tile, double-buffered
        + 2 * tk * c_out_p * 2       # X' tile (bf16), double-buffered
        + 2 * 8 * c_out_p * 4        # bias: (1,C) sublane-pads to (8,C), 2 bufs
        + 2 * tm * c_out_p * 4       # output tile (f32), double-buffered
        + tm * c_out_p * 4           # f32 accumulator scratch
    )


def _choose_tiles(n, c_out_p, tile_m, tile_k, a_bytes):
    n8 = _round_up(max(n, 1), 8)
    n128 = _round_up(max(n, 1), 128)

    tm = _round_up(min(tile_m, n8), 8)
    tk = _round_up(min(tile_k, n128), 128)

    # Shrink tiles if the (layout-padded) VMEM footprint exceeds the budget.
    while _vmem_need(tm, tk, c_out_p, a_bytes) > _VMEM_BUDGET and tk > 256:
        tk = _round_up(tk // 2, 128)
    while _vmem_need(tm, tk, c_out_p, a_bytes) > _VMEM_BUDGET and tm > 64:
        tm = _round_up(tm // 2, 8)

    # v7x megacore: keep an even number (>= 2) of row strips when the graph is
    # big enough to split.  Padded zero strips / rows are mathematically inert.
    n_strips = -(-n8 // tm)
    if n_strips == 1 and n8 > 256:
        tm = _round_up(-(-n8 // 2), 8)
        n_strips = 2
    elif n_strips > 1 and n_strips % 2 == 1:
        n_strips += 1

    n_rows = tm * n_strips
    n_cols = _round_up(n, tk)
    return tm, tk, n_rows, n_cols


# ----------------------------------------------------------------------------
# pallas_call wrapper for the aggregation kernel.
# ----------------------------------------------------------------------------
def gcn_aggregate_pallas(a_pad, xp_pad, b_pad, tm, tk):
    n_rows, n_cols = a_pad.shape
    c_out_p = xp_pad.shape[1]
    a_bytes = jnp.dtype(a_pad.dtype).itemsize
    grid = (n_rows // tm, n_cols // tk)

    vmem_need = _vmem_need(tm, tk, c_out_p, a_bytes)
    vmem_limit = int(min(max(2 * vmem_need, 32 << 20), 48 << 20))

    cost = pl.CostEstimate(
        flops=2 * n_rows * n_cols * c_out_p,
        transcendentals=0,
        bytes_accessed=(
            n_rows * n_cols * a_bytes            # A streamed once
            + grid[0] * n_cols * c_out_p * 2     # X' re-streamed per row strip
            + n_rows * c_out_p * 4               # output
        ),
    )

    return pl.pallas_call(
        gcn_agg_kernel,
        out_shape=jax.ShapeDtypeStruct((n_rows, c_out_p), jnp.float32),
        grid=grid,
        in_specs=[
            pl.BlockSpec((tm, tk), lambda i, k: (i, k)),          # A tile
            pl.BlockSpec((tk, c_out_p), lambda i, k: (k, 0)),     # X' K-slice
            pl.BlockSpec((1, c_out_p), lambda i, k: (0, 0)),      # bias
        ],
        out_specs=pl.BlockSpec((tm, c_out_p), lambda i, k: (i, 0)),
        scratch_shapes=[pltpu.VMEM((tm, c_out_p), jnp.float32)],
        compiler_params=pltpu.CompilerParams(
            dimension_semantics=("parallel", "arbitrary"),
            vmem_limit_bytes=vmem_limit,
        ),
        cost_estimate=cost,
    )(a_pad, xp_pad, b_pad)


# ----------------------------------------------------------------------------
# Glue: dense normalized adjacency built directly into the padded buffer
# (PyG gcn_norm semantics: add self loops, D^-1/2 (A+I) D^-1/2).
# TODO(synk): the scatter-based adjacency build has no clean dense Pallas
# equivalent; for a static graph it should be built once and cached, and for
# sparse graphs a block-sparse (scalar-prefetch) grid is the 10-100x lever.
# ----------------------------------------------------------------------------
def build_normalized_adjacency_padded(edge_index, num_nodes, n_rows, n_cols,
                                      edge_weight=None, dtype=jnp.bfloat16):
    src = edge_index[0]
    dst = edge_index[1]
    if edge_weight is None:
        edge_weight = jnp.ones((src.shape[0],), dtype=jnp.float32)

    loop_idx = jnp.arange(num_nodes, dtype=src.dtype)
    src = jnp.concatenate([src, loop_idx])
    dst = jnp.concatenate([dst, loop_idx])
    w = jnp.concatenate(
        [edge_weight.astype(jnp.float32), jnp.ones((num_nodes,), jnp.float32)]
    )

    deg = jnp.zeros((num_nodes,), jnp.float32).at[dst].add(w)
    deg_inv_sqrt = jnp.where(deg > 0, jax.lax.rsqrt(deg), 0.0)
    norm = deg_inv_sqrt[src] * w * deg_inv_sqrt[dst]

    # Scatter-add directly into the padded buffer; single cast to the stream
    # dtype (bf16 by default; fp8 on v7x / int8 on v5e-v6e are possible
    # accuracy-permitting variants of the same structure).
    a = jnp.zeros((n_rows, n_cols), jnp.float32).at[dst, src].add(norm)
    return a.astype(dtype)


# ----------------------------------------------------------------------------
# LinearEncoder equivalent: single GCNConv(in_channels, out_channels)
# ----------------------------------------------------------------------------
@functools.partial(jax.jit, static_argnames=("tile_m", "tile_k"))
def linear_encoder_forward(x, edge_index, weight, bias, edge_weight=None,
                           *, tile_m=512, tile_k=2048):
    n, c_in = x.shape
    c_out = weight.shape[0]
    c_out_p = _round_up(c_out, 128)

    tm, tk, n_rows, n_cols = _choose_tiles(
        n, c_out_p, tile_m, tile_k, a_bytes=jnp.dtype(jnp.bfloat16).itemsize
    )

    # A_norm: built directly at the padded shape, streamed as bf16.
    a_pad = build_normalized_adjacency_padded(
        edge_index, n, n_rows, n_cols, edge_weight, dtype=jnp.bfloat16
    )

    # X' = x @ W^T precomputed in f32 (tiny: N x C_in x C_out), then cast to a
    # lane-dense bf16 operand for the aggregation kernel.
    xp = x.astype(jnp.float32) @ weight.T.astype(jnp.float32)
    xp_pad = jnp.zeros((n_cols, c_out_p), jnp.bfloat16).at[:n, :c_out].set(
        xp.astype(jnp.bfloat16)
    )

    b_pad = jnp.zeros((1, c_out_p), jnp.float32).at[0, :c_out].set(
        bias.astype(jnp.float32)
    )

    out = gcn_aggregate_pallas(a_pad, xp_pad, b_pad, tm, tk)
    return out[:n, :c_out]


if __name__ == "__main__":
    key = jax.random.PRNGKey(0)
    k_x, k_w, k_b = jax.random.split(key, 3)

    num_nodes = 16
    in_channels = 8
    out_channels = 16

    # node features
    x = jax.random.normal(k_x, (num_nodes, in_channels), dtype=jnp.float32)

    # deterministic ring graph (bidirectional edges), edge_index: (2, E)
    idx = jnp.arange(num_nodes, dtype=jnp.int32)
    src = jnp.concatenate([idx, (idx + 1) % num_nodes])
    dst = jnp.concatenate([(idx + 1) % num_nodes, idx])
    edge_index = jnp.stack([src, dst], axis=0)

    # deterministic GCNConv parameters (glorot-ish scale), nonzero bias
    scale = 1.0 / jnp.sqrt(jnp.float32(in_channels))
    weight = jax.random.normal(k_w, (out_channels, in_channels), jnp.float32) * scale
    bias = jax.random.normal(k_b, (out_channels,), jnp.float32) * 0.1

    out = linear_encoder_forward(x, edge_index, weight, bias)
    out = jax.block_until_ready(out)

    # pure-JAX f32 reference; tolerance loosened for the bf16 A / X' stream
    # (documented precision choice; the f32 path is the non-quantized option).
    def ref_adjacency(edge_index, num_nodes):
        s, d = edge_index[0], edge_index[1]
        loop = jnp.arange(num_nodes, dtype=s.dtype)
        s = jnp.concatenate([s, loop])
        d = jnp.concatenate([d, loop])
        w = jnp.ones((s.shape[0],), jnp.float32)
        deg = jnp.zeros((num_nodes,), jnp.float32).at[d].add(w)
        dis = jnp.where(deg > 0, 1.0 / jnp.sqrt(deg), 0.0)
        norm = dis[s] * w * dis[d]
        return jnp.zeros((num_nodes, num_nodes), jnp.float32).at[d, s].add(norm)

    a_ref = ref_adjacency(edge_index, num_nodes)
    ref = a_ref @ (x @ weight.T) + bias[None, :]
    assert out.shape == (num_nodes, out_channels)
    assert jnp.allclose(out, ref, atol=2e-2, rtol=2e-2), (
        float(jnp.max(jnp.abs(out - ref)))
    )

    print("KERNEL_OK")
</pallas_src>

<mosaic_0001>
module attributes {stable_mosaic.version = 11 : i64} {
  func.func private @main(%arg0: i32) attributes {dimension_semantics = [#tpu.dimension_semantics<core_parallel>], iteration_bounds = array<i64: 2>, tpu.core_type = #tpu.core_type<sc_scalar_subcore>, window_params = []} {
    return
  }
}

module attributes {stable_mosaic.version = 11 : i64} {
  func.func private @main(%arg0: i32) attributes {dimension_semantics = [#tpu.dimension_semantics<core_parallel>], iteration_bounds = array<i64: 2>, tpu.core_type = #tpu.core_type<sc_scalar_subcore>, window_params = []} {
    return
  }
}

module attributes {stable_mosaic.version = 11 : i64} {
  func.func @gcn_agg_kernel(%arg0: i32, %arg1: i32, %arg2: memref<16x128xbf16, #tpu.memory_space<vmem>>, %arg3: memref<128x128xbf16, #tpu.memory_space<vmem>>, %arg4: memref<1x128xf32, #tpu.memory_space<vmem>>, %arg5: memref<16x128xf32, #tpu.memory_space<vmem>>, %arg6: memref<16x128xf32, #tpu.memory_space<vmem>>) attributes {dimension_semantics = [#tpu.dimension_semantics<parallel>, #tpu.dimension_semantics<arbitrary>], iteration_bounds = array<i64: 1, 1>, scalar_prefetch = 0 : i64, scratch_operands = 1 : i64, tpu.core_type = #tpu.core_type<tc>, window_params = [{transform_indices = @transform_0, window_bounds = array<i64: 16, 128>}, {transform_indices = @transform_1, window_bounds = array<i64: 128, 128>}, {pipeline_mode = #tpu.pipeline_mode<synchronous>, transform_indices = @transform_2, window_bounds = array<i64: 1, 128>}, {transform_indices = @transform_3, window_bounds = array<i64: 16, 128>}]} {
    %c0_i32 = arith.constant 0 : i32
    %0 = arith.cmpi eq, %arg1, %c0_i32 : i32
    %1 = arith.extui %0 : i1 to i32
    %c0_i32_0 = arith.constant 0 : i32
    %2 = arith.cmpi ne, %1, %c0_i32_0 : i32
    scf.if %2 {
      %cst_10 = arith.constant 0.000000e+00 : f32
      %12 = vector.broadcast %cst_10 : f32 to vector<16x128xf32>
      %c0_11 = arith.constant 0 : index
      %c0_12 = arith.constant 0 : index
      %13 = vector.load %arg6[%c0_11, %c0_12] : memref<16x128xf32, #tpu.memory_space<vmem>>, vector<16x128xf32>
      tpu.vector_store %arg6[%c0_11, %c0_12], %12 {strides = array<i32>} : memref<16x128xf32, #tpu.memory_space<vmem>>, vector<16x128xf32>,
    } else {
    }
    %c0 = arith.constant 0 : index
    %c0_1 = arith.constant 0 : index
    %3 = vector.load %arg6[%c0, %c0_1] : memref<16x128xf32, #tpu.memory_space<vmem>>, vector<16x128xf32>
    %c0_2 = arith.constant 0 : index
    %c0_3 = arith.constant 0 : index
    %4 = vector.load %arg2[%c0_2, %c0_3] : memref<16x128xbf16, #tpu.memory_space<vmem>>, vector<16x128xbf16>
    %c0_4 = arith.constant 0 : index
    %c0_5 = arith.constant 0 : index
    %5 = vector.load %arg3[%c0_4, %c0_5] : memref<128x128xbf16, #tpu.memory_space<vmem>>, vector<128x128xbf16>
    %cst = arith.constant dense<0.000000e+00> : vector<16x128xf32>
    %6 = tpu.matmul %4, %5, %cst {dimension_numbers = #tpu.dot_dimension_numbers<[1], [0], [0], [1], [0, 0, 1, 1], [], []>} : vector<16x128xbf16>, vector<128x128xbf16>, vector<16x128xf32> -> vector<16x128xf32>
    %7 = arith.addf %3, %6 : vector<16x128xf32>
    %c0_6 = arith.constant 0 : index
    %c0_7 = arith.constant 0 : index
    %8 = vector.load %arg6[%c0_6, %c0_7] : memref<16x128xf32, #tpu.memory_space<vmem>>, vector<16x128xf32>
    tpu.vector_store %arg6[%c0_6, %c0_7], %7 {strides = array<i32>} : memref<16x128xf32, #tpu.memory_space<vmem>>, vector<16x128xf32>,
    %c0_i32_8 = arith.constant 0 : i32
    %9 = arith.cmpi eq, %arg1, %c0_i32_8 : i32
    %10 = arith.extui %9 : i1 to i32
    %c0_i32_9 = arith.constant 0 : i32
    %11 = arith.cmpi ne, %10, %c0_i32_9 : i32
    scf.if %11 {
      %c0_10 = arith.constant 0 : index
      %c0_11 = arith.constant 0 : index
      %12 = vector.load %arg6[%c0_10, %c0_11] : memref<16x128xf32, #tpu.memory_space<vmem>>, vector<16x128xf32>
      %c0_12 = arith.constant 0 : index
      %c0_13 = arith.constant 0 : index
      %13 = vector.load %arg4[%c0_12, %c0_13] : memref<1x128xf32, #tpu.memory_space<vmem>>, vector<1x128xf32>
      %14 = vector.broadcast %13 : vector<1x128xf32> to vector<16x128xf32>
      %15 = arith.addf %12, %14 : vector<16x128xf32>
      %c0_14 = arith.constant 0 : index
      %c0_15 = arith.constant 0 : index
      %16 = vector.load %arg5[%c0_14, %c0_15] : memref<16x128xf32, #tpu.memory_space<vmem>>, vector<16x128xf32>
      tpu.vector_store %arg5[%c0_14, %c0_15], %15 {strides = array<i32>} : memref<16x128xf32, #tpu.memory_space<vmem>>, vector<16x128xf32>,
    } else {
    }
    return
  }
  func.func @transform_0(%arg0: i32, %arg1: i32) -> (i32, i32) {
    %c0_i32 = arith.constant 0 : i32
    return %arg0, %arg1 : i32, i32
  }
  func.func @transform_1(%arg0: i32, %arg1: i32) -> (i32, i32) {
    %c0_i32 = arith.constant 0 : i32
    %c0_i32_0 = arith.constant 0 : i32
    return %arg1, %c0_i32 : i32, i32
  }
  func.func @transform_2(%arg0: i32, %arg1: i32) -> (i32, i32) {
    %c0_i32 = arith.constant 0 : i32
    %c0_i32_0 = arith.constant 0 : i32
    %c0_i32_1 = arith.constant 0 : i32
    return %c0_i32, %c0_i32_0 : i32, i32
  }
  func.func @transform_3(%arg0: i32, %arg1: i32) -> (i32, i32) {
    %c0_i32 = arith.constant 0 : i32
    %c0_i32_0 = arith.constant 0 : i32
    return %arg0, %c0_i32 : i32, i32
  }
}

</mosaic_0001>

<bundles_post_ra>
// kernel: mul.1
= control target key start
LH: loop header
LB: loop body
LE: loop exit
PB: predicated region body
PF: predicated region fallthrough
CT: control target
= control target key end

     0   :  { %s34_s0 = inlined_call_operand.vmem [shape: f32[48], index: 0, kind: input, shape index: {}]   ;;  %s35_s1 = inlined_call_operand.vmem [shape: f32[48], index: 1, kind: input, shape index: {}]   ;;  %s36_s2 = inlined_call_operand.vmem [shape: f32[48], index: 2, kind: output, shape index: {}]  }
   0x1   :  { %v3_v0 = vld [vmem:[%s34_s0] sm:$0x1] }
   0x2   :  { %v4_v1 = vld [vmem:[%s35_s1] sm:$0x1] }
   0x3   :  { %v7_v2 = vmul.f32 %v4_v1, %v3_v0 }
   0x5   :  { %9 = vst [vmem:[%s36_s2] sm:$0x1] %v7_v2 }

// kernel: linear_encoder_forward.1
= control target key start
LH: loop header
LB: loop body
LE: loop exit
PB: predicated region body
PF: predicated region fallthrough
CT: control target
= control target key end

     0   :  { %v250_v1 = vmov 0.0   ;;  %vm251_vm0 = vmmov 0   ;;  %s317_s0 = inlined_call_operand.vmem [shape: bf16[16,128], index: 0, kind: input, shape index: {}]   ;;  %s318_s1 = inlined_call_operand.vmem [shape: bf16[128,128], index: 1, kind: input, shape index: {}]   ;;  %s319_s2 = inlined_call_operand.vmem [shape: f32[1,128], index: 2, kind: input, shape index: {}]   ;;  %s320_s3 = inlined_call_operand.hbm [shape: f32[16,128], index: 3, kind: output, shape index: {}]  }
   0x1   :  { %v217_v0 = vld [vmem:[%s318_s1] sm:$0xff]   ;;  %192 = vmatprep.subr.bf16.mxu0 %v250_v1  ;;  %v218_v2 = vld [vmem:[%s318_s1 + $0x8] sm:$0xff]   ;;  %208 = vmatprep.mubr.msk.bf16.mxu0 %vm251_vm0, %v250_v1  ;;  %v219_v3 = vld [vmem:[%s318_s1 + $0x10] sm:$0xff]  }
   0x2   :  { %193 = vmatpush3.bf16.msra.mxu0 %v217_v0 }
   0x3   :  { %194 = vmatprep.subr.bf16.mxu0 %v250_v1 }
   0x6   :  { %195 = vmatpush3.bf16.msra.mxu0 %v218_v2 }
   0x7   :  { %196 = vmatprep.subr.bf16.mxu0 %v250_v1 }
   0x8   :  { %8 = vsyncpa [#allocation4], 0  ;;  %v220_v4 = vld [vmem:[%s318_s1 + $0x18] sm:$0xff]   ;;  %v221_v5 = vld [vmem:[%s318_s1 + $0x20] sm:$0xff]   ;;  %s252_s5 = smov [#allocation3]  }
   0x9   :  { %v222_v6 = vld [vmem:[%s318_s1 + $0x28] sm:$0xff]   ;;  %v223_v7 = vld [vmem:[%s318_s1 + $0x30] sm:$0xff]   ;;  %v224_v8 = vld [vmem:[%s318_s1 + $0x38] sm:$0xff]   ;;  %s162_s6 = sshll.u32 %s252_s5, 4  ;;  %s163_s6 = int_to_ptr.vmem [resolvable:$true] %s162_s6 }
   0xa   :  { %197 = vmatpush3.bf16.msra.mxu0 %v219_v3  ;;  %v225_v9 = vld [vmem:[%s317_s0] sm:$0xff]   ;;  %s226_s1 = scalar_lea.vmem %s163_s6, 256  ;;  %p231_p1 = scmp.lt.s32.totalorder %s163_s6, %s163_s6 }
   0xb   :  { %198 = vmatprep.subr.bf16.mxu0 %v250_v1  ;;  %v182_v10 = vld [vmem:[%s319_s2] ss:$0 sm:$0xff]  ;;  %p227_p0 = scmp.ne.s32.totalorder %s163_s6, %s226_s1  ;;  %p232_p2 = scmp.lt.s32.totalorder %s226_s1, %s226_s1 }
   0xd   :  { %p233_p3 = por %p232_p2, %p231_p1 }
   0xe   :  { %199 = vmatpush3.bf16.msra.mxu0 %v220_v4 }
   0xf   :  { %200 = vmatprep.subr.bf16.mxu0 %v250_v1  ;;  %p234_p4 = pnand %p233_p3, %p227_p0 }
  0x12   :  { %201 = vmatpush3.bf16.msra.mxu0 %v221_v5 }
  0x13   :  { %202 = vmatprep.subr.bf16.mxu0 %v250_v1 }
  0x16   :  { %203 = vmatpush3.bf16.msra.mxu0 %v222_v6 }
  0x17   :  { %204 = vmatprep.subr.bf16.mxu0 %v250_v1 }
  0x1a   :  { %205 = vmatpush3.bf16.msra.mxu0 %v223_v7 }
  0x1b   :  { %206 = vmatprep.subr.bf16.mxu0 %v250_v1 }
  0x1e   :  { %207 = vmatpush3.bf16.msra.mxu0 %v224_v8 }
  0x21   :  { %209 = vmatmul.mubr.bf16.vlgmr.msra.gmra.mrb[0].mxu0 %v225_v9 }
  0xf4   :  { %v130_v11 = vpop.f32.mrb[0].mxu0 }
  0xf5   :  { %v153_v12 = vadd.f32 %v182_v10, %v130_v11  ;;  %v210_v13 = vpop.f32.mrb[1].mxu0 }
  0xf6   :  { %v133_v14 = vpop.f32.mrb[2].mxu0 }
  0xf7   :  { %155 = vst [vmem:[#allocation3] sm:$0xff] %v153_v12  ;;  %v154_v15 = vadd.f32 %v182_v10, %v133_v14  ;;  %v211_v16 = vpop.f32.mrb[3].mxu0 }
  0xf9   :  { %156 = vst [vmem:[#allocation3 + $0x8] sm:$0xff] %v154_v15 }
  0xfa   :  { %237 = shalt.err (!%p234_p4)
}
  0xfb   :  { %s238_s7 = scalar_lea.hbm %s320_s3, 256 }
  0xfc   :  { %p239_p5 = scmp.ne.s32.totalorder %s320_s3, %s238_s7  ;;  %p242_p6 = scmp.lt.u32.totalorder %s238_s7, %s320_s3 }
  0xfe   :  { %p244_p7 = pnand %p242_p6, %p239_p5 }
 0x100   :  { %247 = shalt.err (!%p244_p7)
}
 0x101   :  { %s253_s12 = smov 128   ;;  %s254_s13 = smov 8  }
 0x102   :  { %168 = dma.vmem_to_hbm [thread:$0]  %s163_s6, 256, %s320_s3, [#allocation4], %s253_s12, %s253_s12, %s254_s13  }
 0x103   :  { %248 = dma.done.wait [#allocation4], 256  }
 0x104   :  { %249 = vsyncadd [#allocation4], 4294967040 }
 0x105   :  { %172 = vsyncpa [#allocation4], 1 }

</bundles_post_ra>
